<compile_context>
chip_gen: v5e
topology: v5e:2x2
jax: 0.10.0
libtpu: 0.0.40
codegen_flags: <defaults>
</compile_context>

<pallas_src>
import functools

import jax
import jax.numpy as jnp
from jax import lax
from jax.experimental import pallas as pl
from jax.experimental.pallas import tpu as pltpu


def _round_up(x, m):
    return (x + m - 1) // m * m


def _largest_divisor_leq(n, cap):
    cap = max(1, min(n, cap))
    for d in range(cap, 0, -1):
        if n % d == 0:
            return d
    return 1


def rnn_recurrence_kernel(xp_ref,     # (tile_S, tile_B, H) = x @ W_ih0^T + b0   (compute dtype)
                          w_hh0_ref,  # (H, H)   layer-0 hidden-to-hidden        (compute dtype)
                          w_ih1_ref,  # (H, H)   layer-1 input-to-hidden         (compute dtype)
                          w_hh1_ref,  # (H, H)   layer-1 hidden-to-hidden        (compute dtype)
                          b1_ref,     # (1, H)   b_ih_l1 + b_hh_l1               (f32)
                          w_fc1_ref,  # (H, 150)                                  (f32)
                          b_fc1_ref,  # (1, 150)
                          w_fc2_ref,  # (1, 150) fc2 weight as row vector
                          b_fc2_ref,  # (1, 1)
                          out_ref,    # (tile_B, 1) f32
                          h0_ref,     # scratch (tile_B, H) f32, persists across s steps
                          h1_ref,     # scratch (tile_B, H) f32
                          *, unroll):
    tile_s = xp_ref.shape[0]
    s_idx = pl.program_id(1)

    @pl.when(s_idx == 0)
    def _init():
        h0_ref[...] = jnp.zeros_like(h0_ref)
        h1_ref[...] = jnp.zeros_like(h1_ref)

    # Hoisted loads (JAX does not CSE these inside the loop).
    w_hh0 = w_hh0_ref[...]
    w_ih1 = w_ih1_ref[...]
    w_hh1 = w_hh1_ref[...]
    b1 = b1_ref[...]            # (1, H): broadcast at add time, not materialized
    cdt = w_hh0.dtype           # compute dtype of the matmul operands

    def step(t, carry):
        h0, h1 = carry          # carried state stays f32
        # Layer-1 hidden-to-hidden term does NOT depend on h0_t: issue it first
        # so it overlaps layer-0's matmul+tanh (shortens the serial chain and
        # removes the previous per-step lane concat entirely).
        h1_hh = jnp.dot(h1.astype(cdt), w_hh1,
                        preferred_element_type=jnp.float32) + b1
        # Layer 0: input projection + b0 were hoisted to the XLA wrapper.
        h0 = jnp.tanh(xp_ref[t].astype(jnp.float32)
                      + jnp.dot(h0.astype(cdt), w_hh0,
                                preferred_element_type=jnp.float32))
        # Layer 1.
        h1 = jnp.tanh(jnp.dot(h0.astype(cdt), w_ih1,
                              preferred_element_type=jnp.float32) + h1_hh)
        return (h0, h1)

    # Bounded partial unroll: exposes the layer-0(t+1) / layer-1(t) overlap to the
    # scheduler without exploding code size when tile_s is large.
    h0, h1 = lax.fori_loop(0, tile_s, step, (h0_ref[...], h1_ref[...]),
                           unroll=unroll)
    h0_ref[...] = h0
    h1_ref[...] = h1

    @pl.when(s_idx == pl.num_programs(1) - 1)
    def _finalize():
        # fc1 + ReLU on the last layer's final hidden state.
        z = jnp.dot(h1, w_fc1_ref[...], preferred_element_type=jnp.float32)
        z = jnp.maximum(z + b_fc1_ref[...], 0.0)                    # (tile_B, 150)
        # fc2 (out_features=1) as elementwise-multiply + lane reduction.
        out = jnp.sum(z * w_fc2_ref[...], axis=-1, keepdims=True) + b_fc2_ref[...]
        out_ref[...] = out.astype(out_ref.dtype)


@functools.partial(jax.jit, static_argnames=("tile_s", "tile_b", "compute_dtype"))
def rnn_model_forward(inp, params, *, tile_s=None, tile_b=None,
                      compute_dtype=jnp.bfloat16):
    """inp: (B, S) int32 token ids. Returns (B, 1) float32."""
    emb = params["embedding"]                              # (V, 300)
    B, S = inp.shape
    E = emb.shape[1]
    H = params["w_hh0_t"].shape[1]
    cdt = jnp.dtype(compute_dtype)
    sub = 8 if cdt.itemsize == 4 else 16                   # sublane packing

    # ---- tile sizing (VMEM- and megacore-aware) -----------------------------
    if tile_b is None:
        if B <= sub:
            tile_b = sub
        elif B <= 256:
            # >= 2 batch blocks so the "parallel" axis shards across v7x's 2 TCs.
            tile_b = _round_up(pl.cdiv(B, 2), sub)
        else:
            tile_b = 128                                    # fills v5e MXU M-dim
    else:
        tile_b = _round_up(tile_b, sub)
    B_pad = _round_up(B, tile_b)

    if tile_s is None:
        # ~2 MiB per streamed x_proj block (BlockSpec double-buffers it), well
        # under the 32 MiB scoped budget (v5e default is 16 MiB -> raised below).
        target = max(1, (2 * 1024 * 1024) // (tile_b * H * cdt.itemsize))
        tile_s = _largest_divisor_leq(S, target)
    assert S % tile_s == 0, (S, tile_s)
    unroll = min(tile_s, 8)

    # ---- batch padding (rows are independent; padded rows sliced off) -------
    if B_pad != B:
        inp = jnp.pad(inp, ((0, B_pad - B), (0, 0)))

    # ---- hoisted layer-0 input projection (the 300-deep contraction) --------
    # Project FIRST on the batch-major (B,S,300) tensor, THEN transpose the
    # small (B,S,H) result: the HBM-bound transpose moves ~9.4x fewer bytes.
    x = jnp.take(emb, inp, axis=0)                          # (B_pad, S, 300) f32
    x_proj = jnp.dot(x.reshape(B_pad * S, E).astype(cdt),
                     params["w_ih0_t"].astype(cdt),
                     preferred_element_type=jnp.float32)    # f32 accumulation
    x_proj = x_proj.reshape(B_pad, S, H) + params["b0"]     # fold b_ih0+b_hh0
    x_proj = jnp.transpose(x_proj, (1, 0, 2)).astype(cdt)   # (S, B_pad, H)

    grid = (B_pad // tile_b, S // tile_s)   # (parallel batch, arbitrary sequence)
    const2 = lambda b, s: (0, 0)
    kernel = functools.partial(rnn_recurrence_kernel, unroll=unroll)

    out = pl.pallas_call(
        kernel,
        out_shape=jax.ShapeDtypeStruct((B_pad, 1), jnp.float32),
        grid=grid,
        in_specs=[
            # Streamed, double-buffered tile of projected activations.
            pl.BlockSpec((tile_s, tile_b, H), lambda b, s: (s, b, 0)),
            # Weights: full arrays, resident across the grid.
            pl.BlockSpec((H, H), const2),
            pl.BlockSpec((H, H), const2),
            pl.BlockSpec((H, H), const2),
            pl.BlockSpec((1, H), const2),
            pl.BlockSpec((H, 150), const2),
            pl.BlockSpec((1, 150), const2),
            pl.BlockSpec((1, 150), const2),
            pl.BlockSpec((1, 1), const2),
        ],
        # Output block index constant over s -> resident; written once at s==last.
        out_specs=pl.BlockSpec((tile_b, 1), lambda b, s: (b, 0)),
        scratch_shapes=[pltpu.VMEM((tile_b, H), jnp.float32),
                        pltpu.VMEM((tile_b, H), jnp.float32)],
        compiler_params=pltpu.CompilerParams(
            dimension_semantics=("parallel", "arbitrary"),
            vmem_limit_bytes=32 * 1024 * 1024),
    )(x_proj,
      params["w_hh0_t"].astype(cdt),
      params["w_ih1_t"].astype(cdt),
      params["w_hh1_t"].astype(cdt),
      params["b1"],
      params["w_fc1_t"], params["b_fc1"],
      params["w_fc2_row"], params["b_fc2"])

    return out[:B]


def init_params(key, vocab=50, emb_dim=300, hidden=32):
    """Deterministic synthetic parameters matching RNNModel.__init__ shapes."""
    ks = jax.random.split(key, 12)
    k_rnn = 1.0 / jnp.sqrt(hidden)

    def unif(k, shape, bound):
        return jax.random.uniform(k, shape, jnp.float32, -bound, bound)

    embedding = jax.random.normal(ks[0], (vocab, emb_dim), jnp.float32) * 0.1
    embedding = embedding.at[0].set(0.0)  # padding_idx=0

    # nn.RNN layer 0: W_ih (H,300), W_hh (H,H), b_ih (H,), b_hh (H,)
    w_ih0 = unif(ks[1], (hidden, emb_dim), k_rnn)
    w_hh0 = unif(ks[2], (hidden, hidden), k_rnn)
    b_ih0 = unif(ks[3], (hidden,), k_rnn)
    b_hh0 = unif(ks[4], (hidden,), k_rnn)
    # nn.RNN layer 1
    w_ih1 = unif(ks[5], (hidden, hidden), k_rnn)
    w_hh1 = unif(ks[6], (hidden, hidden), k_rnn)
    b_ih1 = unif(ks[7], (hidden,), k_rnn)
    b_hh1 = unif(ks[8], (hidden,), k_rnn)
    # fc1: Linear(hidden, 150); fc2: Linear(150, 1)
    k_fc1 = 1.0 / jnp.sqrt(hidden)
    w_fc1 = unif(ks[9], (150, hidden), k_fc1)
    b_fc1 = unif(ks[10], (150,), k_fc1)
    k_fc2 = 1.0 / jnp.sqrt(150.0)
    w_fc2 = unif(ks[11], (1, 150), k_fc2)
    b_fc2 = jnp.zeros((1,), jnp.float32)

    return {
        "embedding": embedding,
        "w_ih0_t": w_ih0.T,                 # (300, H)
        "w_hh0_t": w_hh0.T,                 # (H, H)
        "b0": (b_ih0 + b_hh0)[None, :],     # (1, H)
        "w_ih1_t": w_ih1.T,                 # (H, H)
        "w_hh1_t": w_hh1.T,                 # (H, H)
        "b1": (b_ih1 + b_hh1)[None, :],     # (1, H)
        "w_fc1_t": w_fc1.T,                 # (H, 150)
        "b_fc1": b_fc1[None, :],            # (1, 150)
        "w_fc2_row": w_fc2,                 # (1, 150)
        "b_fc2": b_fc2[None, :],            # (1, 1)
    }


def reference_forward(inp, params):
    """Pure-JAX f32 reference of the same forward pass (sanity check)."""
    x = jnp.take(params["embedding"], inp, axis=0)
    x = jnp.transpose(x, (1, 0, 2))
    S, B, _ = x.shape
    H = params["w_hh0_t"].shape[1]
    h0 = jnp.zeros((B, H), jnp.float32)
    h1 = jnp.zeros((B, H), jnp.float32)
    for t in range(S):
        h0 = jnp.tanh(x[t] @ params["w_ih0_t"] + h0 @ params["w_hh0_t"] + params["b0"])
        h1 = jnp.tanh(h0 @ params["w_ih1_t"] + h1 @ params["w_hh1_t"] + params["b1"])
    z = jnp.maximum(h1 @ params["w_fc1_t"] + params["b_fc1"], 0.0)
    return jnp.sum(z * params["w_fc2_row"], axis=-1, keepdims=True) + params["b_fc2"]


if __name__ == "__main__":
    key = jax.random.PRNGKey(0)
    k_params, k_inp = jax.random.split(key)

    BATCH, SEQ, VOCAB, HIDDEN = 2, 8, 50, 32
    params = init_params(k_params, vocab=VOCAB, emb_dim=300, hidden=HIDDEN)
    inp = jax.random.randint(k_inp, (BATCH, SEQ), 0, VOCAB, dtype=jnp.int32)

    ref = reference_forward(inp, params)

    # f32 compute path: bit-tight check of kernel semantics.
    # tile_s=4 -> 2 sequence grid steps: exercises the scratch-carried hidden
    # state and double-buffered input streaming even at this tiny demo size.
    out_f32 = rnn_model_forward(inp, params, tile_s=4, compute_dtype=jnp.float32)
    out_f32 = jax.block_until_ready(out_f32)
    assert out_f32.shape == (BATCH, 1), out_f32.shape
    assert jnp.allclose(out_f32, ref, atol=1e-5, rtol=1e-5), (out_f32, ref)

    # Default bf16 compute path (the performance configuration): relaxed tolerance.
    out_bf16 = rnn_model_forward(inp, params, tile_s=4)
    out_bf16 = jax.block_until_ready(out_bf16)
    assert out_bf16.shape == (BATCH, 1), out_bf16.shape
    assert jnp.allclose(out_bf16, ref, atol=5e-2, rtol=5e-2), (out_bf16, ref)

    print("KERNEL_OK")
</pallas_src>

<mosaic_0001>
module attributes {stable_mosaic.version = 11 : i64} {
  func.func @rnn_recurrence_kernel(%arg0: i32, %arg1: i32, %arg2: memref<4x8x32xf32, #tpu.memory_space<vmem>>, %arg3: memref<32x32xf32, #tpu.memory_space<vmem>>, %arg4: memref<32x32xf32, #tpu.memory_space<vmem>>, %arg5: memref<32x32xf32, #tpu.memory_space<vmem>>, %arg6: memref<1x32xf32, #tpu.memory_space<vmem>>, %arg7: memref<32x150xf32, #tpu.memory_space<vmem>>, %arg8: memref<1x150xf32, #tpu.memory_space<vmem>>, %arg9: memref<1x150xf32, #tpu.memory_space<vmem>>, %arg10: memref<1x1xf32, #tpu.memory_space<vmem>>, %arg11: memref<8x1xf32, #tpu.memory_space<vmem>>, %arg12: memref<8x32xf32, #tpu.memory_space<vmem>>, %arg13: memref<8x32xf32, #tpu.memory_space<vmem>>) attributes {dimension_semantics = [#tpu.dimension_semantics<parallel>, #tpu.dimension_semantics<arbitrary>], iteration_bounds = array<i64: 1, 2>, scalar_prefetch = 0 : i64, scratch_operands = 2 : i64, tpu.core_type = #tpu.core_type<tc>, window_params = [{transform_indices = @transform_0, window_bounds = array<i64: 4, 8, 32>}, {pipeline_mode = #tpu.pipeline_mode<synchronous>, transform_indices = @transform_1, window_bounds = array<i64: 32, 32>}, {pipeline_mode = #tpu.pipeline_mode<synchronous>, transform_indices = @transform_2, window_bounds = array<i64: 32, 32>}, {pipeline_mode = #tpu.pipeline_mode<synchronous>, transform_indices = @transform_3, window_bounds = array<i64: 32, 32>}, {pipeline_mode = #tpu.pipeline_mode<synchronous>, transform_indices = @transform_4, window_bounds = array<i64: 1, 32>}, {pipeline_mode = #tpu.pipeline_mode<synchronous>, transform_indices = @transform_5, window_bounds = array<i64: 32, 150>}, {pipeline_mode = #tpu.pipeline_mode<synchronous>, transform_indices = @transform_6, window_bounds = array<i64: 1, 150>}, {pipeline_mode = #tpu.pipeline_mode<synchronous>, transform_indices = @transform_7, window_bounds = array<i64: 1, 150>}, {pipeline_mode = #tpu.pipeline_mode<synchronous>, transform_indices = @transform_8, window_bounds = array<i64: 1, 1>}, {transform_indices = @transform_9, window_bounds = array<i64: 8, 1>}]} {
    %c0_i32 = arith.constant 0 : i32
    %0 = arith.cmpi eq, %arg1, %c0_i32 : i32
    %1 = arith.extui %0 : i1 to i32
    %c0_i32_0 = arith.constant 0 : i32
    %2 = arith.cmpi ne, %1, %c0_i32_0 : i32
    scf.if %2 {
      %cst_38 = arith.constant 0.000000e+00 : f32
      %62 = vector.broadcast %cst_38 : f32 to vector<8x32xf32>
      %c0_39 = arith.constant 0 : index
      %c0_40 = arith.constant 0 : index
      %63 = vector.load %arg12[%c0_39, %c0_40] : memref<8x32xf32, #tpu.memory_space<vmem>>, vector<8x32xf32>
      tpu.vector_store %arg12[%c0_39, %c0_40], %62 {strides = array<i32>} : memref<8x32xf32, #tpu.memory_space<vmem>>, vector<8x32xf32>,
      %cst_41 = arith.constant 0.000000e+00 : f32
      %64 = vector.broadcast %cst_41 : f32 to vector<8x32xf32>
      %c0_42 = arith.constant 0 : index
      %c0_43 = arith.constant 0 : index
      %65 = vector.load %arg13[%c0_42, %c0_43] : memref<8x32xf32, #tpu.memory_space<vmem>>, vector<8x32xf32>
      tpu.vector_store %arg13[%c0_42, %c0_43], %64 {strides = array<i32>} : memref<8x32xf32, #tpu.memory_space<vmem>>, vector<8x32xf32>,
    } else {
    }
    %c0 = arith.constant 0 : index
    %c0_1 = arith.constant 0 : index
    %3 = vector.load %arg3[%c0, %c0_1] : memref<32x32xf32, #tpu.memory_space<vmem>>, vector<32x32xf32>
    %c0_2 = arith.constant 0 : index
    %c0_3 = arith.constant 0 : index
    %4 = vector.load %arg4[%c0_2, %c0_3] : memref<32x32xf32, #tpu.memory_space<vmem>>, vector<32x32xf32>
    %c0_4 = arith.constant 0 : index
    %c0_5 = arith.constant 0 : index
    %5 = vector.load %arg5[%c0_4, %c0_5] : memref<32x32xf32, #tpu.memory_space<vmem>>, vector<32x32xf32>
    %c0_6 = arith.constant 0 : index
    %c0_7 = arith.constant 0 : index
    %6 = vector.load %arg6[%c0_6, %c0_7] : memref<1x32xf32, #tpu.memory_space<vmem>>, vector<1x32xf32>
    %c0_8 = arith.constant 0 : index
    %c0_9 = arith.constant 0 : index
    %7 = vector.load %arg12[%c0_8, %c0_9] : memref<8x32xf32, #tpu.memory_space<vmem>>, vector<8x32xf32>
    %c0_10 = arith.constant 0 : index
    %c0_11 = arith.constant 0 : index
    %8 = vector.load %arg13[%c0_10, %c0_11] : memref<8x32xf32, #tpu.memory_space<vmem>>, vector<8x32xf32>
    %c0_i32_12 = arith.constant 0 : i32
    %cst = arith.constant dense<0.000000e+00> : vector<8x32xf32>
    %9 = tpu.matmul %8, %5, %cst {dimension_numbers = #tpu.dot_dimension_numbers<[1], [0], [0], [1], [0, 0, 1, 1], [], []>} : vector<8x32xf32>, vector<32x32xf32>, vector<8x32xf32> -> vector<8x32xf32>
    %10 = vector.broadcast %6 : vector<1x32xf32> to vector<8x32xf32>
    %11 = arith.addf %9, %10 : vector<8x32xf32>
    %12 = arith.index_cast %c0_i32_12 : i32 to index
    %c0_13 = arith.constant 0 : index
    %c0_14 = arith.constant 0 : index
    %13 = vector.load %arg2[%12, %c0_13, %c0_14] : memref<4x8x32xf32, #tpu.memory_space<vmem>>, vector<1x8x32xf32>
    %14 = vector.shape_cast %13 : vector<1x8x32xf32> to vector<8x32xf32>
    %cst_15 = arith.constant dense<0.000000e+00> : vector<8x32xf32>
    %15 = tpu.matmul %7, %3, %cst_15 {dimension_numbers = #tpu.dot_dimension_numbers<[1], [0], [0], [1], [0, 0, 1, 1], [], []>} : vector<8x32xf32>, vector<32x32xf32>, vector<8x32xf32> -> vector<8x32xf32>
    %16 = arith.addf %14, %15 : vector<8x32xf32>
    %17 = math.tanh %16 : vector<8x32xf32>
    %cst_16 = arith.constant dense<0.000000e+00> : vector<8x32xf32>
    %18 = tpu.matmul %17, %4, %cst_16 {dimension_numbers = #tpu.dot_dimension_numbers<[1], [0], [0], [1], [0, 0, 1, 1], [], []>} : vector<8x32xf32>, vector<32x32xf32>, vector<8x32xf32> -> vector<8x32xf32>
    %19 = arith.addf %18, %11 : vector<8x32xf32>
    %20 = math.tanh %19 : vector<8x32xf32>
    %c1_i32 = arith.constant 1 : i32
    %cst_17 = arith.constant dense<0.000000e+00> : vector<8x32xf32>
    %21 = tpu.matmul %20, %5, %cst_17 {dimension_numbers = #tpu.dot_dimension_numbers<[1], [0], [0], [1], [0, 0, 1, 1], [], []>} : vector<8x32xf32>, vector<32x32xf32>, vector<8x32xf32> -> vector<8x32xf32>
    %22 = vector.broadcast %6 : vector<1x32xf32> to vector<8x32xf32>
    %23 = arith.addf %21, %22 : vector<8x32xf32>
    %24 = arith.index_cast %c1_i32 : i32 to index
    %c0_18 = arith.constant 0 : index
    %c0_19 = arith.constant 0 : index
    %25 = vector.load %arg2[%24, %c0_18, %c0_19] : memref<4x8x32xf32, #tpu.memory_space<vmem>>, vector<1x8x32xf32>
    %26 = vector.shape_cast %25 : vector<1x8x32xf32> to vector<8x32xf32>
    %cst_20 = arith.constant dense<0.000000e+00> : vector<8x32xf32>
    %27 = tpu.matmul %17, %3, %cst_20 {dimension_numbers = #tpu.dot_dimension_numbers<[1], [0], [0], [1], [0, 0, 1, 1], [], []>} : vector<8x32xf32>, vector<32x32xf32>, vector<8x32xf32> -> vector<8x32xf32>
    %28 = arith.addf %26, %27 : vector<8x32xf32>
    %29 = math.tanh %28 : vector<8x32xf32>
    %cst_21 = arith.constant dense<0.000000e+00> : vector<8x32xf32>
    %30 = tpu.matmul %29, %4, %cst_21 {dimension_numbers = #tpu.dot_dimension_numbers<[1], [0], [0], [1], [0, 0, 1, 1], [], []>} : vector<8x32xf32>, vector<32x32xf32>, vector<8x32xf32> -> vector<8x32xf32>
    %31 = arith.addf %30, %23 : vector<8x32xf32>
    %32 = math.tanh %31 : vector<8x32xf32>
    %c2_i32 = arith.constant 2 : i32
    %cst_22 = arith.constant dense<0.000000e+00> : vector<8x32xf32>
    %33 = tpu.matmul %32, %5, %cst_22 {dimension_numbers = #tpu.dot_dimension_numbers<[1], [0], [0], [1], [0, 0, 1, 1], [], []>} : vector<8x32xf32>, vector<32x32xf32>, vector<8x32xf32> -> vector<8x32xf32>
    %34 = vector.broadcast %6 : vector<1x32xf32> to vector<8x32xf32>
    %35 = arith.addf %33, %34 : vector<8x32xf32>
    %36 = arith.index_cast %c2_i32 : i32 to index
    %c0_23 = arith.constant 0 : index
    %c0_24 = arith.constant 0 : index
    %37 = vector.load %arg2[%36, %c0_23, %c0_24] : memref<4x8x32xf32, #tpu.memory_space<vmem>>, vector<1x8x32xf32>
    %38 = vector.shape_cast %37 : vector<1x8x32xf32> to vector<8x32xf32>
    %cst_25 = arith.constant dense<0.000000e+00> : vector<8x32xf32>
    %39 = tpu.matmul %29, %3, %cst_25 {dimension_numbers = #tpu.dot_dimension_numbers<[1], [0], [0], [1], [0, 0, 1, 1], [], []>} : vector<8x32xf32>, vector<32x32xf32>, vector<8x32xf32> -> vector<8x32xf32>
    %40 = arith.addf %38, %39 : vector<8x32xf32>
    %41 = math.tanh %40 : vector<8x32xf32>
    %cst_26 = arith.constant dense<0.000000e+00> : vector<8x32xf32>
    %42 = tpu.matmul %41, %4, %cst_26 {dimension_numbers = #tpu.dot_dimension_numbers<[1], [0], [0], [1], [0, 0, 1, 1], [], []>} : vector<8x32xf32>, vector<32x32xf32>, vector<8x32xf32> -> vector<8x32xf32>
    %43 = arith.addf %42, %35 : vector<8x32xf32>
    %44 = math.tanh %43 : vector<8x32xf32>
    %c3_i32 = arith.constant 3 : i32
    %cst_27 = arith.constant dense<0.000000e+00> : vector<8x32xf32>
    %45 = tpu.matmul %44, %5, %cst_27 {dimension_numbers = #tpu.dot_dimension_numbers<[1], [0], [0], [1], [0, 0, 1, 1], [], []>} : vector<8x32xf32>, vector<32x32xf32>, vector<8x32xf32> -> vector<8x32xf32>
    %46 = vector.broadcast %6 : vector<1x32xf32> to vector<8x32xf32>
    %47 = arith.addf %45, %46 : vector<8x32xf32>
    %48 = arith.index_cast %c3_i32 : i32 to index
    %c0_28 = arith.constant 0 : index
    %c0_29 = arith.constant 0 : index
    %49 = vector.load %arg2[%48, %c0_28, %c0_29] : memref<4x8x32xf32, #tpu.memory_space<vmem>>, vector<1x8x32xf32>
    %50 = vector.shape_cast %49 : vector<1x8x32xf32> to vector<8x32xf32>
    %cst_30 = arith.constant dense<0.000000e+00> : vector<8x32xf32>
    %51 = tpu.matmul %41, %3, %cst_30 {dimension_numbers = #tpu.dot_dimension_numbers<[1], [0], [0], [1], [0, 0, 1, 1], [], []>} : vector<8x32xf32>, vector<32x32xf32>, vector<8x32xf32> -> vector<8x32xf32>
    %52 = arith.addf %50, %51 : vector<8x32xf32>
    %53 = math.tanh %52 : vector<8x32xf32>
    %cst_31 = arith.constant dense<0.000000e+00> : vector<8x32xf32>
    %54 = tpu.matmul %53, %4, %cst_31 {dimension_numbers = #tpu.dot_dimension_numbers<[1], [0], [0], [1], [0, 0, 1, 1], [], []>} : vector<8x32xf32>, vector<32x32xf32>, vector<8x32xf32> -> vector<8x32xf32>
    %55 = arith.addf %54, %47 : vector<8x32xf32>
    %56 = math.tanh %55 : vector<8x32xf32>
    %c4_i32 = arith.constant 4 : i32
    %c0_32 = arith.constant 0 : index
    %c0_33 = arith.constant 0 : index
    %57 = vector.load %arg12[%c0_32, %c0_33] : memref<8x32xf32, #tpu.memory_space<vmem>>, vector<8x32xf32>
    tpu.vector_store %arg12[%c0_32, %c0_33], %53 {strides = array<i32>} : memref<8x32xf32, #tpu.memory_space<vmem>>, vector<8x32xf32>,
    %c0_34 = arith.constant 0 : index
    %c0_35 = arith.constant 0 : index
    %58 = vector.load %arg13[%c0_34, %c0_35] : memref<8x32xf32, #tpu.memory_space<vmem>>, vector<8x32xf32>
    tpu.vector_store %arg13[%c0_34, %c0_35], %56 {strides = array<i32>} : memref<8x32xf32, #tpu.memory_space<vmem>>, vector<8x32xf32>,
    %c1_i32_36 = arith.constant 1 : i32
    %59 = arith.cmpi eq, %arg1, %c1_i32_36 : i32
    %60 = arith.extui %59 : i1 to i32
    %c0_i32_37 = arith.constant 0 : i32
    %61 = arith.cmpi ne, %60, %c0_i32_37 : i32
    scf.if %61 {
      %c0_38 = arith.constant 0 : index
      %c0_39 = arith.constant 0 : index
      %62 = vector.load %arg7[%c0_38, %c0_39] : memref<32x150xf32, #tpu.memory_space<vmem>>, vector<32x150xf32>
      %cst_40 = arith.constant dense<0.000000e+00> : vector<8x150xf32>
      %63 = tpu.matmul %56, %62, %cst_40 {dimension_numbers = #tpu.dot_dimension_numbers<[1], [0], [0], [1], [0, 0, 1, 1], [], []>} : vector<8x32xf32>, vector<32x150xf32>, vector<8x150xf32> -> vector<8x150xf32>
      %c0_41 = arith.constant 0 : index
      %c0_42 = arith.constant 0 : index
      %64 = vector.load %arg8[%c0_41, %c0_42] : memref<1x150xf32, #tpu.memory_space<vmem>>, vector<1x150xf32>
      %65 = vector.broadcast %64 : vector<1x150xf32> to vector<8x150xf32>
      %66 = arith.addf %63, %65 : vector<8x150xf32>
      %cst_43 = arith.constant 0.000000e+00 : f32
      %67 = vector.broadcast %cst_43 : f32 to vector<8x150xf32>
      %68 = arith.maximumf %66, %67 : vector<8x150xf32>
      %c0_44 = arith.constant 0 : index
      %c0_45 = arith.constant 0 : index
      %69 = vector.load %arg9[%c0_44, %c0_45] : memref<1x150xf32, #tpu.memory_space<vmem>>, vector<1x150xf32>
      %70 = vector.broadcast %69 : vector<1x150xf32> to vector<8x150xf32>
      %71 = arith.mulf %68, %70 : vector<8x150xf32>
      %cst_46 = arith.constant dense<0.000000e+00> : vector<8xf32>
      %72 = vector.multi_reduction <add>, %71, %cst_46 [1] : vector<8x150xf32> to vector<8xf32>
      %73 = vector.shape_cast %72 : vector<8xf32> to vector<8x1xf32>
      %c0_47 = arith.constant 0 : index
      %c0_48 = arith.constant 0 : index
      %74 = vector.load %arg10[%c0_47, %c0_48] : memref<1x1xf32, #tpu.memory_space<vmem>>, vector<1x1xf32>
      %75 = vector.broadcast %74 : vector<1x1xf32> to vector<8x1xf32>
      %76 = arith.addf %73, %75 : vector<8x1xf32>
      %c0_49 = arith.constant 0 : index
      %c0_50 = arith.constant 0 : index
      %77 = vector.load %arg11[%c0_49, %c0_50] : memref<8x1xf32, #tpu.memory_space<vmem>>, vector<8x1xf32>
      tpu.vector_store %arg11[%c0_49, %c0_50], %76 {strides = array<i32>} : memref<8x1xf32, #tpu.memory_space<vmem>>, vector<8x1xf32>,
    } else {
    }
    return
  }
  func.func @transform_0(%arg0: i32, %arg1: i32) -> (i32, i32, i32) {
    %c0_i32 = arith.constant 0 : i32
    %c0_i32_0 = arith.constant 0 : i32
    return %arg1, %arg0, %c0_i32 : i32, i32, i32
  }
  func.func @transform_1(%arg0: i32, %arg1: i32) -> (i32, i32) {
    %c0_i32 = arith.constant 0 : i32
    %c0_i32_0 = arith.constant 0 : i32
    %c0_i32_1 = arith.constant 0 : i32
    return %c0_i32, %c0_i32_0 : i32, i32
  }
  func.func @transform_2(%arg0: i32, %arg1: i32) -> (i32, i32) {
    %c0_i32 = arith.constant 0 : i32
    %c0_i32_0 = arith.constant 0 : i32
    %c0_i32_1 = arith.constant 0 : i32
    return %c0_i32, %c0_i32_0 : i32, i32
  }
  func.func @transform_3(%arg0: i32, %arg1: i32) -> (i32, i32) {
    %c0_i32 = arith.constant 0 : i32
    %c0_i32_0 = arith.constant 0 : i32
    %c0_i32_1 = arith.constant 0 : i32
    return %c0_i32, %c0_i32_0 : i32, i32
  }
  func.func @transform_4(%arg0: i32, %arg1: i32) -> (i32, i32) {
    %c0_i32 = arith.constant 0 : i32
    %c0_i32_0 = arith.constant 0 : i32
    %c0_i32_1 = arith.constant 0 : i32
    return %c0_i32, %c0_i32_0 : i32, i32
  }
  func.func @transform_5(%arg0: i32, %arg1: i32) -> (i32, i32) {
    %c0_i32 = arith.constant 0 : i32
    %c0_i32_0 = arith.constant 0 : i32
    %c0_i32_1 = arith.constant 0 : i32
    return %c0_i32, %c0_i32_0 : i32, i32
  }
  func.func @transform_6(%arg0: i32, %arg1: i32) -> (i32, i32) {
    %c0_i32 = arith.constant 0 : i32
    %c0_i32_0 = arith.constant 0 : i32
    %c0_i32_1 = arith.constant 0 : i32
    return %c0_i32, %c0_i32_0 : i32, i32
  }
  func.func @transform_7(%arg0: i32, %arg1: i32) -> (i32, i32) {
    %c0_i32 = arith.constant 0 : i32
    %c0_i32_0 = arith.constant 0 : i32
    %c0_i32_1 = arith.constant 0 : i32
    return %c0_i32, %c0_i32_0 : i32, i32
  }
  func.func @transform_8(%arg0: i32, %arg1: i32) -> (i32, i32) {
    %c0_i32 = arith.constant 0 : i32
    %c0_i32_0 = arith.constant 0 : i32
    %c0_i32_1 = arith.constant 0 : i32
    return %c0_i32, %c0_i32_0 : i32, i32
  }
  func.func @transform_9(%arg0: i32, %arg1: i32) -> (i32, i32) {
    %c0_i32 = arith.constant 0 : i32
    %c0_i32_0 = arith.constant 0 : i32
    return %arg0, %c0_i32 : i32, i32
  }
}

</mosaic_0001>

<bundles_post_ra>
// kernel: rnn_model_forward.1
= control target key start
LH: loop header
LB: loop body
LE: loop exit
PB: predicated region body
PF: predicated region fallthrough
CT: control target
= control target key end

     0   :  { %s966_s11 = smov 0   ;;  %s968_s12 = smov 0   ;;  %s1107_s0 = inlined_call_operand.vmem [shape: f32[8,8,32], index: 0, kind: input, shape index: {}]   ;;  %s1108_s1 = inlined_call_operand.vmem [shape: f32[32,32], index: 1, kind: input, shape index: {}]   ;;  %s1109_s2 = inlined_call_operand.vmem [shape: f32[32,32], index: 2, kind: input, shape index: {}]   ;;  %s1110_s3 = inlined_call_operand.vmem [shape: f32[32,32], index: 3, kind: input, shape index: {}]   ;;  %s1111_s4 = inlined_call_operand.vmem [shape: f32[1,32], index: 4, kind: input, shape index: {}]   ;;  %s1112_s5 = inlined_call_operand.vmem [shape: f32[32,150], index: 5, kind: input, shape index: {}]   ;;  %s1113_s6 = inlined_call_operand.vmem [shape: f32[1,150], index: 6, kind: input, shape index: {}]   ;;  %s1114_s7 = inlined_call_operand.vmem [shape: f32[1,150], index: 7, kind: input, shape index: {}]   ;;  %s1115_s8 = inlined_call_operand.<no memory space> [shape: f32[1,1], index: 8, kind: input, shape index: {}]   ;;  %s1116_s9 = inlined_call_operand.vmem [shape: f32[8,1], index: 9, kind: output, shape index: {}]  }
   0x1   :  { %v14_v0 = vstv %s1115_s8  ;;  %s970_s13 = smov 0  }
   0x2   :  { %15 = vst [vmem:[#allocation4] sm:$0x1] %v14_v0 }
   0x3 LB: > { %s30_s8 = sadd.s32 1, %s906_s12  ;;  %p820_p0 = scmp.ge.s32.totalorder %s910_s13, 1  ;;  %s910_s13 = sphi %s970_s13, %s21_s13   ;;  %s906_s12 = sphi %s968_s12, %s1118_s12   ;;  %s902_s11 = sphi %s966_s11, %s1117_s11  }
   0x4   : > { %p31_p1 = scmp.ge.s32.totalorder %s30_s8, 2  ;;  %p307_p2 = scmp.lt.s32.totalorder %s910_s13, 3 }
   0x6   : > { %s1120_s8 = smov (%p31_p1, %s30_s8), 0  ;;  %p308_p3 = pnand %p820_p0, %p307_p2 }
   0x7   : > { %s821_s14 = sshll.u32 (!%p308_p3), %s902_s11, 2  ;;  %p823_p5 = scmp.ne.s32.totalorder (!%p308_p3), %s902_s11, 0 }
   0x8   : > { %311 = sbr.rel (%p308_p3) target bundleno = 1001 (0x3e9), region = 56  ;;  %p346_p4 = scmp.lt.s32.totalorder (!%p308_p3), %s821_s14, 7 }
   0xd   : > { %s1122_s14 = smov (!%p346_p4, %s821_s14), 7  ;;  %361 = sbr.rel (%p823_p5) target bundleno = 21 (0x15), region = 60 }
   0xe   : > { %s822_s15 = sshll.u32 %s1122_s14, 3 }
   0xf   : > { %s990_s18 = scalar_lea.vmem %s1107_s0, %s822_s15 }
  0x12   : > { %vm362_vm0 = vcmask 261120   ;;  %v912_v1 = vmov 0.0  }
  0x13   : > { %363 = vst.msk [vmem:[#allocation2] sm:$0xff] %vm362_vm0, %v912_v1 }
  0x14   : > { %364 = vst.msk [vmem:[#allocation3] sm:$0xff] %vm362_vm0, %v912_v1 }
  0x15 PF: > { %v996_v2 = vld [vmem:[%s1108_s1 + $0x18] sm:$0xff]  ;;  %v1001_v3 = vld [vmem:[%s1108_s1 + $0x10] sm:$0xff]  ;;  %v366_v5 = vld [vmem:[%s1108_s1 + $0x8] sm:$0xff]  ;;  %vm383_vm1 = vcmask 261120   ;;  %p839_p6 = scmp.ne.s32.totalorder %s902_s11, 1 }
  0x16   : > { %423 = vmatpush.msra.mxu1 %v996_v2  ;;  %v376_v4 = vld [vmem:[%s1110_s3 + $0x18] sm:$0xff]  ;;  %v375_v6 = vld [vmem:[%s1110_s3 + $0x10] sm:$0xff]  ;;  %v374_v7 = vld [vmem:[%s1110_s3 + $0x8] sm:$0xff] }
  0x17   : > { %399 = vmatpush.msra.mxu0 %v376_v4  ;;  %472 = vmatpush.msra.mxu3 %v376_v4  ;;  %v365_v8 = vld [vmem:[%s1108_s1] sm:$0xff]  ;;  %v372_v12 = vld [vmem:[%s1109_s2 + $0x18] sm:$0xff]  ;;  %v371_v13 = vld [vmem:[%s1109_s2 + $0x10] sm:$0xff] }
  0x18   : > { %424 = vmatpush.msra.mxu1 %v1001_v3  ;;  %v373_v10 = vld [vmem:[%s1110_s3] sm:$0xff]  ;;  %448 = vmatpush.msra.mxu2 %v372_v12  ;;  %v370_v14 = vld [vmem:[%s1109_s2 + $0x8] sm:$0xff]  ;;  %v832_v34 = vld [vmem:[%s990_s18 + $0x10] sm:$0xff] }
  0x19   : > { %400 = vmatpush.msra.mxu0 %v375_v6  ;;  %473 = vmatpush.msra.mxu3 %v375_v6  ;;  %v369_v15 = vld [vmem:[%s1109_s2] sm:$0xff]  ;;  %v828_v21 = vld [vmem:[%s990_s18 + $0x8] sm:$0xff]  ;;  %v836_v43 = vld [vmem:[%s990_s18 + $0x18] sm:$0xff] }
  0x1a   : > { %425 = vmatpush.msra.mxu1 %v366_v5  ;;  %v378_v9 = vld [vmem:[#allocation2] sm:$0xff]  ;;  %449 = vmatpush.msra.mxu2 %v371_v13 }
  0x1b   : > { %401 = vmatpush.msra.mxu0 %v374_v7  ;;  %474 = vmatpush.msra.mxu3 %v374_v7  ;;  %v379_v11 = vld [vmem:[#allocation3] sm:$0xff]  ;;  %v407_v16 = vld [vmem:[%s990_s18] sm:$0xff] }
  0x1c   : > { %426 = vmatpush.msra.mxu1 %v365_v8  ;;  %450 = vmatpush.msra.mxu2 %v370_v14  ;;  %v870_v22 = vld [vmem:[%s1111_s4] ss:$0 sm:$0xff] }
  0x1d   : > { %825 = vmatmul.msk.f32.vlgmr.msra.gmra.mxu1 %vm383_vm1, %v378_v9  ;;  %402 = vmatpush.msra.mxu0 %v373_v10 }
  0x1e   : > { %475 = vmatpush.msra.mxu3 %v373_v10  ;;  %824 = vmatmul.msk.f32.vlgmr.msra.gmra.mxu0 %vm383_vm1, %v379_v11 }
  0x1f   : > { %494 = vmatpush.msrb.mxu0 %v996_v2  ;;  %519 = vmatpush.msrb.mxu1 %v372_v12 }
  0x20   : > { %565 = vmatpush.msrb.mxu3 %v996_v2  ;;  %451 = vmatpush.msra.mxu2 %v369_v15 }
  0x21   : > { %495 = vmatpush.msrb.mxu0 %v1001_v3  ;;  %520 = vmatpush.msrb.mxu1 %v371_v13 }
  0x22   : > { %566 = vmatpush.msrb.mxu3 %v1001_v3  ;;  %543 = vmatpush.msrb.mxu2 %v376_v4 }
  0x23   : > { %496 = vmatpush.msrb.mxu0 %v366_v5  ;;  %521 = vmatpush.msrb.mxu1 %v370_v14 }
  0x24   : > { %567 = vmatpush.msrb.mxu3 %v366_v5  ;;  %544 = vmatpush.msrb.mxu2 %v375_v6 }
  0x25   : > { %497 = vmatpush.msrb.mxu0 %v365_v8  ;;  %522 = vmatpush.msrb.mxu1 %v369_v15 }
  0x26   : > { %568 = vmatpush.msrb.mxu3 %v365_v8  ;;  %545 = vmatpush.msrb.mxu2 %v374_v7 }
  0x27   : > { %590 = vmatpush.msra.mxu0 %v372_v12  ;;  %614 = vmatpush.msra.mxu1 %v376_v4 }
  0x28   : > { %546 = vmatpush.msrb.mxu2 %v373_v10 }
  0x29   : > { %591 = vmatpush.msra.mxu0 %v371_v13  ;;  %615 = vmatpush.msra.mxu1 %v375_v6 }
  0x2b   : > { %592 = vmatpush.msra.mxu0 %v370_v14  ;;  %616 = vmatpush.msra.mxu1 %v374_v7 }
  0x2d   : > { %593 = vmatpush.msra.mxu0 %v369_v15  ;;  %617 = vmatpush.msra.mxu1 %v373_v10 }
  0x9a   : > { %v428_v17 = vpop.f32.mrf.mxu1 }
  0x9b   : > { %v431_v18 = vadd.f32 %v428_v17, %v407_v16  ;;  %v404_v20 = vpop.f32.mrf.mxu0 }
  0x9c   : > { %v405_v25 = vadd.f32 %v870_v22, %v404_v20 }
  0x9d   : > { %871 = vtanh.f32 %v431_v18 }
  0xa3   : > { %v872_v19 = vpop.eup %871 }
  0xa4   : > { %826 = vmatmul.msk.f32.vlgmr.msra.gmra.mxu2 %vm383_vm1, %v872_v19  ;;  %829 = vmatmul.msk.f32.vlgmr.msrb.gmra.mxu0 %vm383_vm1, %v872_v19 }
  0xa5   : > { %636 = vmatpush.msra.mxu2 %v996_v2 }
  0xa7   : > { %637 = vmatpush.msra.mxu2 %v1001_v3 }
  0xa9   : > { %638 = vmatpush.msra.mxu2 %v366_v5 }
  0xab   : > { %639 = vmatpush.msra.mxu2 %v365_v8 }
 0x121   : > { %v499_v23 = vpop.f32.mrf.mxu0 }
 0x122   : > { %v502_v24 = vadd.f32 %v828_v21, %v499_v23 }
 0x124   : > { %873 = vtanh.f32 %v502_v24 }
 0x127   : > { %v453_v26 = vpop.f32.mrf.mxu2 }
 0x128   : > { %v454_v27 = vadd.f32 %v453_v26, %v405_v25 }
 0x12a   : > { %v874_v28 = vpop.eup %873  ;;  %875 = vtanh.f32 %v454_v27 }
 0x12b   : > { %830 = vmatmul.msk.f32.vlgmr.msrb.gmra.mxu1 %vm383_vm1, %v874_v28 }
 0x130   : > { %v876_v29 = vpop.eup %875 }
 0x131   : > { %827 = vmatmul.msk.f32.vlgmr.msra.gmra.mxu3 %vm383_vm1, %v876_v29 }
 0x132   : > { %661 = vmatpush.msra.mxu3 %v372_v12 }
 0x134   : > { %662 = vmatpush.msra.mxu3 %v371_v13 }
 0x136   : > { %663 = vmatpush.msra.mxu3 %v370_v14 }
 0x138   : > { %664 = vmatpush.msra.mxu3 %v369_v15 }
 0x139   : > { %833 = vmatmul.msk.f32.vlgmr.msrb.gmra.mxu3 %vm383_vm1, %v874_v28 }
 0x1a8   : > { %v524_v32 = vpop.f32.mrf.mxu1 }
 0x1b4   : > { %v477_v30 = vpop.f32.mrf.mxu3 }
 0x1b5   : > { %v478_v31 = vadd.f32 %v870_v22, %v477_v30 }
 0x1b7   : > { %v525_v33 = vadd.f32 %v524_v32, %v478_v31 }
 0x1b9   : > { %877 = vtanh.f32 %v525_v33 }
 0x1bc   : > { %v570_v35 = vpop.f32.mrf.mxu3 }
 0x1bd   : > { %v573_v36 = vadd.f32 %v832_v34, %v570_v35 }
 0x1bf   : > { %v878_v37 = vpop.eup %877  ;;  %879 = vtanh.f32 %v573_v36 }
 0x1c0   : > { %831 = vmatmul.msk.f32.vlgmr.msrb.gmra.mxu2 %vm383_vm1, %v878_v37 }
 0x1c5   : > { %v880_v38 = vpop.eup %879 }
 0x1c6   : > { %834 = vmatmul.msk.f32.vlgmr.msra.gmra.mxu0 %vm383_vm1, %v880_v38 }
 0x1c8   : > { %837 = vmatmul.msk.f32.vlgmr.msra.gmra.mxu2 %vm383_vm1, %v880_v38 }
 0x243   : > { %v548_v39 = vpop.f32.mrf.mxu2  ;;  %v595_v41 = vpop.f32.mrf.mxu0 }
 0x244   : > { %v549_v40 = vadd.f32 %v870_v22, %v548_v39 }
 0x246   : > { %v596_v42 = vadd.f32 %v595_v41, %v549_v40 }
 0x248   : > { %881 = vtanh.f32 %v596_v42 }
 0x24b   : > { %v641_v44 = vpop.f32.mrf.mxu2 }
 0x24c   : > { %v644_v45 = vadd.f32 %v836_v43, %v641_v44 }
 0x24e   : > { %v882_v46 = vpop.eup %881  ;;  %883 = vtanh.f32 %v644_v45 }
 0x24f   : > { %835 = vmatmul.msk.f32.vlgmr.msra.gmra.mxu1 %vm383_vm1, %v882_v46 }
 0x254   : > { %v884_v47 = vpop.eup %883 }
 0x255   : > { %670 = vst.msk [vmem:[#allocation2] sm:$0xff] %vm383_vm1, %v884_v47  ;;  %838 = vmatmul.msk.f32.vlgmr.msra.gmra.mxu3 %vm383_vm1, %v884_v47 }
 0x2cc   : > { %v619_v48 = vpop.f32.mrf.mxu1 }
 0x2cd   : > { %v620_v49 = vadd.f32 %v870_v22, %v619_v48 }
 0x2d8   : > { %v666_v50 = vpop.f32.mrf.mxu3 }
 0x2d9   : > { %v667_v51 = vadd.f32 %v666_v50, %v620_v49 }
 0x2db   : > { %885 = vtanh.f32 %v667_v51 }
 0x2de   : > { %675 = sbr.rel (%p839_p6) target bundleno = 1001 (0x3e9), region = 64 }
 0x2e1   : > { %v886_v52 = vpop.eup %885 }
 0x2e2   : > { %671 = vst.msk [vmem:[#allocation3] sm:$0xff] %vm383_vm1, %v886_v52 }
 0x2e3   : > { %v683_v53 = vld [vmem:[%s1112_s5 + $0x38] sm:$0xff]  ;;  %v682_v54 = vld [vmem:[%s1112_s5 + $0x30] sm:$0xff]  ;;  %v681_v55 = vld [vmem:[%s1112_s5 + $0x28] sm:$0xff]  ;;  %vm743_vm2 = vcmask 179200   ;;  %vm753_vm3 = vcmask 7168  }
 0x2e4   : > { %725 = vmatpush.msra.mxu1 %v683_v53  ;;  %705 = vmatpush.msra.mxu0 %v682_v54  ;;  %v680_v56 = vld [vmem:[%s1112_s5 + $0x20] sm:$0xff]  ;;  %v679_v57 = vld [vmem:[%s1112_s5 + $0x18] sm:$0xff]  ;;  %v678_v58 = vld [vmem:[%s1112_s5 + $0x10] sm:$0xff] }
 0x2e5   : > { %v677_v59 = vld [vmem:[%s1112_s5 + $0x8] sm:$0xff]  ;;  %v676_v60 = vld [vmem:[%s1112_s5] sm:$0xff]  ;;  %v887_v13 = vld [vmem:[#allocation4] ss:$0 sm:$0xff] }
 0x2e6   : > { %726 = vmatpush.msra.mxu1 %v681_v55  ;;  %706 = vmatpush.msra.mxu0 %v680_v56  ;;  %v684_v61 = vld [vmem:[%s1113_s6] sm:$0x3] }
 0x2e7   : > { %v687_v62 = vperm.slane %v684_v61, 1  ;;  %v686_v63 = vperm.slane %v684_v61, 0  ;;  %v735_v0 = vld [vmem:[%s1114_s7] sm:$0x3] }
 0x2e8   : > { %727 = vmatpush.msra.mxu1 %v679_v57  ;;  %707 = vmatpush.msra.mxu0 %v678_v58  ;;  %v737_v5 = vperm.slane %v735_v0, 0  ;;  %v738_v6 = vperm.slane %v735_v0, 1 }
 0x2ea   : > { %728 = vmatpush.msra.mxu1 %v677_v59  ;;  %708 = vmatpush.msra.mxu0 %v676_v60 }
 0x2eb   : > { %841 = vmatmul.msk.f32.vlgmr.msra.gmra.mxu1 %vm383_vm1, %v886_v52  ;;  %840 = vmatmul.msk.f32.vlgmr.msra.gmra.mxu0 %vm383_vm1, %v886_v52 }
 0x368   : > { %v730_v1 = vpop.f32.mrf.mxu1  ;;  %v710_v2 = vpop.f32.mrf.mxu0 }
 0x369   : > { %v731_v3 = vadd.f32 %v730_v1, %v687_v62  ;;  %v711_v4 = vadd.f32 %v710_v2, %v686_v63 }
 0x36b   : > { %v734_v7 = vmax.f32 %v731_v3, 0.0  ;;  %v733_v8 = vmax.f32 %v711_v4, 0.0 }
 0x36d   : > { %v741_v9 = vmul.f32 %v737_v5, %v733_v8  ;;  %v742_v10 = vmul.f32 %v738_v6, %v734_v7 }
 0x36f   : > { %v744_v11 = vsel %vm743_vm2, %v742_v10, 0.0 }
 0x370   : > { %v745_v12 = vadd.f32 %v744_v11, %v741_v9 }
 0x372   : > { %746 = vadd.xlane.f32.xlu0 %v745_v12 }
 0x3e5   : > { %v747_v14 = vpop.xlane.xlu0 %746 }
 0x3e6   : > { %v752_v15 = vadd.f32 %v887_v13, %v747_v14 }
 0x3e8   : > { %754 = vst.msk [vmem:[%s1116_s9] sm:$0xff] %vm753_vm3, %v752_v15 }
 0x3e9 PF: > { %s21_s13 = sadd.s32 1, %s910_s13   ;;  %s1117_s11 = smov %s906_s12 }
 0x3ea   : > { %p18_p7 = scmp.ge.s32.totalorder %s21_s13, 4   ;;  %s1118_s12 = smov %s1120_s8 }
 0x3ec   :  { %20 = sbr.rel (!%p18_p7) target bundleno = 3 (0x3), region = 97 }

</bundles_post_ra>
